<compile_context>
chip_gen: v6e
topology: v6e:2x2x1
jax: 0.10.0
libtpu: 0.0.40
codegen_flags: <defaults>
</compile_context>

<pallas_src>
import jax
import jax.numpy as jnp
from jax import lax
from jax.experimental import pallas as pl
from jax.experimental.pallas import tpu as pltpu


def _linear_lora_kernel(x_ref, w_ref, b_ref, xa_ref, bb_ref, o_ref, acc_ref):
    """One (i, j, k) grid step of y = x @ W^T + b + XA @ B.

    x_ref  : (tm, tk)  activation tile
    w_ref  : (tn, tk)  weight tile (torch (out, in) layout, no transpose)
    b_ref  : (1,  tn)  bias tile
    xa_ref : (tm, R)   precomputed alpha * (x @ A) tile (hoisted to wrapper)
    bb_ref : (R,  tn)  LoRA B tile
    o_ref  : (tm, tn)  output tile (written once, at k == last)
    acc_ref: (tm, tn)  f32 accumulator (seeded with the bias at k == 0)
    """
    k = pl.program_id(2)

    @pl.when(k == 0)
    def _():
        # Seed the accumulator with the broadcast bias instead of zeros:
        # removes one (tm, tn) VPU add from the last-step epilogue.
        acc_ref[...] = jnp.broadcast_to(
            b_ref[...].astype(jnp.float32), acc_ref.shape)

    # Base path: x @ W^T, contracting the K dim of both operands (MXU, f32 acc).
    acc_ref[...] += lax.dot_general(
        x_ref[...], w_ref[...],
        dimension_numbers=(((1,), (1,)), ((), ())),
        preferred_element_type=jnp.float32)

    @pl.when(k == pl.num_programs(2) - 1)
    def _():
        # LoRA epilogue: XA @ B in the input dtype (bf16 MXU path when bf16),
        # accumulated in f32, then a single store of the output tile.
        lora = jnp.dot(xa_ref[...], bb_ref[...],
                       preferred_element_type=jnp.float32)
        o_ref[...] = (acc_ref[...] + lora).astype(o_ref.dtype)


def _pick_tile(dim, desired, align):
    """Largest `align`-multiple divisor of `dim` that is <= desired (or dim)."""
    if dim <= desired:
        return dim
    t = (min(desired, dim) // align) * align
    while t >= align:
        if dim % t == 0:
            return t
        t -= align
    return dim  # no aligned divisor: fall back to the full (untiled) dim


def _vmem_tile_bytes(tm, tn, tk, r, in_bytes, out_bytes):
    """Rough VMEM footprint: double-buffered I/O tiles + the f32 accumulator.

    Narrow dims pad to (8, 128) vreg tiles in VMEM.
    """
    r_lane = ((r + 127) // 128) * 128
    r_sub = ((r + 7) // 8) * 8
    per_step = (tm * tk * in_bytes          # x tile
                + tn * tk * in_bytes        # W tile
                + 8 * tn * in_bytes         # bias tile (sublane-padded)
                + tm * r_lane * in_bytes    # XA tile (lane-padded)
                + r_sub * tn * in_bytes     # B tile (sublane-padded)
                + tm * tn * out_bytes)      # output tile
    return 2 * per_step + tm * tn * 4       # double-buffered + accumulator


def linear_with_lora(x, w, b, A, B, *, alpha=0.01, tm=None, tn=None, tk=None,
                     vmem_budget_bytes=40 * 1024 * 1024):
    """y = x @ w.T + b + alpha * ((x @ A) @ B).

    x: (..., in), w: (out, in) [torch nn.Linear layout, NOT pre-transposed],
    b: (out,), A: (in, rank), B: (rank, out).  Arbitrary leading dims on x.
    """
    orig_shape = x.shape
    K = orig_shape[-1]
    x2 = x.reshape(-1, K)
    M = x2.shape[0]
    N, K2 = w.shape
    assert K == K2
    R = A.shape[1]
    assert A.shape == (K, R) and B.shape == (R, N) and b.shape == (N,)

    in_bytes = x2.dtype.itemsize
    out_bytes = in_bytes

    # --- Tile selection --------------------------------------------------
    # tm aligned to the sublane packing of the dtype; tn to the MXU column
    # width (256 on v6e/v7x when N allows, else 128); tk to a lane multiple.
    tm_align = 8 if in_bytes >= 4 else (16 if in_bytes == 2 else 32)
    tn_align = 256 if N % 256 == 0 else 128
    tm_des = 512 if tm is None else tm
    tn_des = 1024 if tn is None else tn
    tk_des = (512 if in_bytes >= 4 else 1024) if tk is None else tk

    tm_t = _pick_tile(M, tm_des, tm_align)
    tn_t = _pick_tile(N, tn_des, tn_align)
    tk_t = _pick_tile(K, tk_des, 128)

    # Megacore: a (1, 1, gk) grid leaves one v7x TensorCore idle.  If the
    # caller didn't pin tn and both parallel axes collapsed to 1, split N.
    if tn is None and (M // tm_t) == 1 and (N // tn_t) == 1:
        tn_split = _pick_tile(N, N // 2, tn_align)
        if tn_split < N:
            tn_t = tn_split

    # Keep the tile working set under the VMEM budget (safe on v7x's 64 MiB
    # physical VMEM); also guards the full-dim fallback of _pick_tile.
    for _ in range(16):
        if _vmem_tile_bytes(tm_t, tn_t, tk_t, R, in_bytes, out_bytes) \
                <= vmem_budget_bytes:
            break
        new_tk = _pick_tile(K, max(tk_t // 2, 128), 128)
        if new_tk < tk_t:
            tk_t = new_tk
            continue
        new_tn = _pick_tile(N, max(tn_t // 2, tn_align), tn_align)
        if new_tn < tn_t:
            tn_t = new_tn
            continue
        new_tm = _pick_tile(M, max(tm_t // 2, tm_align), tm_align)
        if new_tm < tm_t:
            tm_t = new_tm
            continue
        break  # cannot shrink further; rely on vmem_limit_bytes headroom

    gm, gn, gk = M // tm_t, N // tn_t, K // tk_t

    est = _vmem_tile_bytes(tm_t, tn_t, tk_t, R, in_bytes, out_bytes)
    vmem_limit = int(min(48 * 1024 * 1024,
                         max(32 * 1024 * 1024, est + (8 << 20))))

    # --- Host-side (tiny) preprocessing ----------------------------------
    b2 = b.reshape(1, N)
    # LoRA down-projection hoisted out of the kernel: x @ A is only M x R, but
    # done in-kernel its rank-R rhs pads to a full MXU column tile on every
    # k-step of every j-tile.  Fold alpha here (M x R scale) so B stays exact.
    xa = jnp.dot(x2, A, preferred_element_type=jnp.float32)
    xa = (alpha * xa).astype(x2.dtype)

    flops = 2 * M * K * N + 2 * M * R * N
    bytes_accessed = (x2.size * x2.dtype.itemsize + w.size * w.dtype.itemsize
                      + b.size * b.dtype.itemsize + xa.size * xa.dtype.itemsize
                      + B.size * B.dtype.itemsize + M * N * out_bytes)
    cost = pl.CostEstimate(flops=flops, transcendentals=0,
                           bytes_accessed=bytes_accessed)

    out = pl.pallas_call(
        _linear_lora_kernel,
        out_shape=jax.ShapeDtypeStruct((M, N), x2.dtype),
        grid_spec=pltpu.PrefetchScalarGridSpec(
            num_scalar_prefetch=0,
            grid=(gm, gn, gk),
            in_specs=[
                pl.BlockSpec((tm_t, tk_t), lambda i, j, k: (i, k)),  # x
                pl.BlockSpec((tn_t, tk_t), lambda i, j, k: (j, k)),  # W (out,in)
                pl.BlockSpec((1, tn_t), lambda i, j, k: (0, j)),     # bias
                pl.BlockSpec((tm_t, R), lambda i, j, k: (i, 0)),     # alpha*(x@A)
                pl.BlockSpec((R, tn_t), lambda i, j, k: (0, j)),     # LoRA B
            ],
            out_specs=pl.BlockSpec((tm_t, tn_t), lambda i, j, k: (i, j)),
            scratch_shapes=[
                pltpu.VMEM((tm_t, tn_t), jnp.float32),   # f32 accumulator
            ],
        ),
        compiler_params=pltpu.CompilerParams(
            dimension_semantics=("parallel", "parallel", "arbitrary"),
            vmem_limit_bytes=vmem_limit,
        ),
        cost_estimate=cost,
    )(x2, w, b2, xa, B)

    return out.reshape(orig_shape[:-1] + (N,))


def _reference(x, w, b, A, B, alpha):
    hi = lax.Precision.HIGHEST
    xf = x.astype(jnp.float32)
    base = jnp.matmul(xf, w.astype(jnp.float32).T, precision=hi) \
        + b.astype(jnp.float32)
    lora = alpha * jnp.matmul(
        jnp.matmul(xf, A.astype(jnp.float32), precision=hi),
        B.astype(jnp.float32), precision=hi)
    return base + lora


if __name__ == "__main__":
    alpha = 0.01
    key = jax.random.PRNGKey(0)
    kx, kw, kb, ka, kB = jax.random.split(key, 5)

    # --- Small shapes consistent with the module: x (batch=2, seq=4, hidden=32),
    #     Linear(32 -> 64), LoRA rank 4. ---
    batch, seq, in_dim, out_dim, rank = 2, 4, 32, 64, 4
    x = jax.random.normal(kx, (batch, seq, in_dim), dtype=jnp.float32)
    w = jax.random.normal(kw, (out_dim, in_dim), dtype=jnp.float32) * 0.1
    b = jax.random.normal(kb, (out_dim,), dtype=jnp.float32) * 0.1
    std_dev = 1.0 / jnp.sqrt(jnp.float32(rank))
    A = jax.random.normal(ka, (in_dim, rank), dtype=jnp.float32) * std_dev
    # torch init is B = zeros; use a nonzero B so the LoRA path is actually
    # numerically exercised against the reference.
    B = jax.random.normal(kB, (rank, out_dim), dtype=jnp.float32) * 0.1

    out = jax.block_until_ready(linear_with_lora(x, w, b, A, B, alpha=alpha))
    ref = _reference(x, w, b, A, B, alpha)
    assert out.shape == (batch, seq, out_dim)
    assert jnp.allclose(out, ref, atol=1e-4, rtol=1e-4)

    # --- Larger shapes that exercise the (M, N, K) tiling and K-reduction. ---
    M2, K2_, N2 = 256, 384, 512
    k1, k2, k3, k4, k5 = jax.random.split(jax.random.PRNGKey(1), 5)
    x2 = jax.random.normal(k1, (M2, K2_), dtype=jnp.float32)
    w2 = jax.random.normal(k2, (N2, K2_), dtype=jnp.float32) * 0.05
    b2_ = jax.random.normal(k3, (N2,), dtype=jnp.float32) * 0.1
    A2 = jax.random.normal(k4, (K2_, rank), dtype=jnp.float32) * std_dev
    B2 = jax.random.normal(k5, (rank, N2), dtype=jnp.float32) * 0.1

    out2 = jax.block_until_ready(
        linear_with_lora(x2, w2, b2_, A2, B2, alpha=alpha,
                         tm=128, tn=128, tk=128))   # grid = (2, 4, 3)
    ref2 = _reference(x2, w2, b2_, A2, B2, alpha)
    assert out2.shape == (M2, N2)
    assert jnp.allclose(out2, ref2, atol=1e-3, rtol=1e-3)

    # --- Default (auto) tiles: exercises the gn>=2 megacore split path. ---
    out2b = jax.block_until_ready(
        linear_with_lora(x2, w2, b2_, A2, B2, alpha=alpha))
    assert jnp.allclose(out2b, ref2, atol=1e-3, rtol=1e-3)

    # --- bf16 inputs with f32 accumulation (MXU-friendly path). ---
    out3 = jax.block_until_ready(
        linear_with_lora(x2.astype(jnp.bfloat16), w2.astype(jnp.bfloat16),
                         b2_.astype(jnp.bfloat16), A2.astype(jnp.bfloat16),
                         B2.astype(jnp.bfloat16), alpha=alpha))
    ref3 = _reference(x2.astype(jnp.bfloat16), w2.astype(jnp.bfloat16),
                      b2_.astype(jnp.bfloat16), A2.astype(jnp.bfloat16),
                      B2.astype(jnp.bfloat16), alpha)
    assert out3.dtype == jnp.bfloat16
    assert jnp.allclose(out3.astype(jnp.float32), ref3, atol=5e-2, rtol=5e-2)

    # TODO(synk): optional pl.Buffered(3) on the W BlockSpec for v7x
    # decode-style (small-M, weight-DMA-bound) shapes was left out to keep the
    # default path maximally portable across generations.

    print("KERNEL_OK")
</pallas_src>

<mosaic_0001>
module attributes {stable_mosaic.version = 11 : i64} {
  func.func @_linear_lora_kernel(%arg0: i32, %arg1: i32, %arg2: i32, %arg3: memref<8x32xf32, #tpu.memory_space<vmem>>, %arg4: memref<64x32xf32, #tpu.memory_space<vmem>>, %arg5: memref<1x64xf32, #tpu.memory_space<vmem>>, %arg6: memref<8x4xf32, #tpu.memory_space<vmem>>, %arg7: memref<4x64xf32, #tpu.memory_space<vmem>>, %arg8: memref<8x64xf32, #tpu.memory_space<vmem>>, %arg9: memref<8x64xf32, #tpu.memory_space<vmem>>) attributes {dimension_semantics = [#tpu.dimension_semantics<parallel>, #tpu.dimension_semantics<parallel>, #tpu.dimension_semantics<arbitrary>], iteration_bounds = array<i64: 1, 1, 1>, scalar_prefetch = 0 : i64, scratch_operands = 1 : i64, tpu.core_type = #tpu.core_type<tc>, window_params = [{transform_indices = @transform_0, window_bounds = array<i64: 8, 32>}, {transform_indices = @transform_1, window_bounds = array<i64: 64, 32>}, {transform_indices = @transform_2, window_bounds = array<i64: 1, 64>}, {transform_indices = @transform_3, window_bounds = array<i64: 8, 4>}, {transform_indices = @transform_4, window_bounds = array<i64: 4, 64>}, {transform_indices = @transform_5, window_bounds = array<i64: 8, 64>}]} {
    %c0_i32 = arith.constant 0 : i32
    %0 = arith.cmpi eq, %arg2, %c0_i32 : i32
    %1 = arith.extui %0 : i1 to i32
    %c0_i32_0 = arith.constant 0 : i32
    %2 = arith.cmpi ne, %1, %c0_i32_0 : i32
    scf.if %2 {
      %c0_10 = arith.constant 0 : index
      %c0_11 = arith.constant 0 : index
      %12 = vector.load %arg5[%c0_10, %c0_11] : memref<1x64xf32, #tpu.memory_space<vmem>>, vector<1x64xf32>
      %13 = vector.shape_cast %12 : vector<1x64xf32> to vector<1x64xf32>
      %14 = vector.broadcast %13 : vector<1x64xf32> to vector<8x64xf32>
      %c0_12 = arith.constant 0 : index
      %c0_13 = arith.constant 0 : index
      %15 = vector.load %arg9[%c0_12, %c0_13] : memref<8x64xf32, #tpu.memory_space<vmem>>, vector<8x64xf32>
      tpu.vector_store %arg9[%c0_12, %c0_13], %14 {strides = array<i32>} : memref<8x64xf32, #tpu.memory_space<vmem>>, vector<8x64xf32>,
    } else {
    }
    %c0 = arith.constant 0 : index
    %c0_1 = arith.constant 0 : index
    %3 = vector.load %arg9[%c0, %c0_1] : memref<8x64xf32, #tpu.memory_space<vmem>>, vector<8x64xf32>
    %c0_2 = arith.constant 0 : index
    %c0_3 = arith.constant 0 : index
    %4 = vector.load %arg3[%c0_2, %c0_3] : memref<8x32xf32, #tpu.memory_space<vmem>>, vector<8x32xf32>
    %c0_4 = arith.constant 0 : index
    %c0_5 = arith.constant 0 : index
    %5 = vector.load %arg4[%c0_4, %c0_5] : memref<64x32xf32, #tpu.memory_space<vmem>>, vector<64x32xf32>
    %cst = arith.constant dense<0.000000e+00> : vector<8x64xf32>
    %6 = tpu.matmul %4, %5, %cst {dimension_numbers = #tpu.dot_dimension_numbers<[1], [1], [0], [0], [0, 0, 1, 0], [], []>} : vector<8x32xf32>, vector<64x32xf32>, vector<8x64xf32> -> vector<8x64xf32>
    %7 = arith.addf %3, %6 : vector<8x64xf32>
    %c0_6 = arith.constant 0 : index
    %c0_7 = arith.constant 0 : index
    %8 = vector.load %arg9[%c0_6, %c0_7] : memref<8x64xf32, #tpu.memory_space<vmem>>, vector<8x64xf32>
    tpu.vector_store %arg9[%c0_6, %c0_7], %7 {strides = array<i32>} : memref<8x64xf32, #tpu.memory_space<vmem>>, vector<8x64xf32>,
    %c0_i32_8 = arith.constant 0 : i32
    %9 = arith.cmpi eq, %arg2, %c0_i32_8 : i32
    %10 = arith.extui %9 : i1 to i32
    %c0_i32_9 = arith.constant 0 : i32
    %11 = arith.cmpi ne, %10, %c0_i32_9 : i32
    scf.if %11 {
      %c0_10 = arith.constant 0 : index
      %c0_11 = arith.constant 0 : index
      %12 = vector.load %arg6[%c0_10, %c0_11] : memref<8x4xf32, #tpu.memory_space<vmem>>, vector<8x4xf32>
      %c0_12 = arith.constant 0 : index
      %c0_13 = arith.constant 0 : index
      %13 = vector.load %arg7[%c0_12, %c0_13] : memref<4x64xf32, #tpu.memory_space<vmem>>, vector<4x64xf32>
      %cst_14 = arith.constant dense<0.000000e+00> : vector<8x64xf32>
      %14 = tpu.matmul %12, %13, %cst_14 {dimension_numbers = #tpu.dot_dimension_numbers<[1], [0], [0], [1], [0, 0, 1, 1], [], []>} : vector<8x4xf32>, vector<4x64xf32>, vector<8x64xf32> -> vector<8x64xf32>
      %c0_15 = arith.constant 0 : index
      %c0_16 = arith.constant 0 : index
      %15 = vector.load %arg9[%c0_15, %c0_16] : memref<8x64xf32, #tpu.memory_space<vmem>>, vector<8x64xf32>
      %16 = arith.addf %15, %14 : vector<8x64xf32>
      %c0_17 = arith.constant 0 : index
      %c0_18 = arith.constant 0 : index
      %17 = vector.load %arg8[%c0_17, %c0_18] : memref<8x64xf32, #tpu.memory_space<vmem>>, vector<8x64xf32>
      tpu.vector_store %arg8[%c0_17, %c0_18], %16 {strides = array<i32>} : memref<8x64xf32, #tpu.memory_space<vmem>>, vector<8x64xf32>,
    } else {
    }
    return
  }
  func.func @transform_0(%arg0: i32, %arg1: i32, %arg2: i32) -> (i32, i32) {
    %c0_i32 = arith.constant 0 : i32
    return %arg0, %arg2 : i32, i32
  }
  func.func @transform_1(%arg0: i32, %arg1: i32, %arg2: i32) -> (i32, i32) {
    %c0_i32 = arith.constant 0 : i32
    return %arg1, %arg2 : i32, i32
  }
  func.func @transform_2(%arg0: i32, %arg1: i32, %arg2: i32) -> (i32, i32) {
    %c0_i32 = arith.constant 0 : i32
    %c0_i32_0 = arith.constant 0 : i32
    return %c0_i32, %arg1 : i32, i32
  }
  func.func @transform_3(%arg0: i32, %arg1: i32, %arg2: i32) -> (i32, i32) {
    %c0_i32 = arith.constant 0 : i32
    %c0_i32_0 = arith.constant 0 : i32
    return %arg0, %c0_i32 : i32, i32
  }
  func.func @transform_4(%arg0: i32, %arg1: i32, %arg2: i32) -> (i32, i32) {
    %c0_i32 = arith.constant 0 : i32
    %c0_i32_0 = arith.constant 0 : i32
    return %c0_i32, %arg1 : i32, i32
  }
  func.func @transform_5(%arg0: i32, %arg1: i32, %arg2: i32) -> (i32, i32) {
    %c0_i32 = arith.constant 0 : i32
    return %arg0, %arg1 : i32, i32
  }
}

</mosaic_0001>

<bundles_post_ra>
// kernel: tpu_custom_call.1
= control target key start
LH: loop header
LB: loop body
LE: loop exit
PB: predicated region body
PF: predicated region fallthrough
CT: control target
= control target key end

     0   :  { %vm44_vm0 = vcmask 261120   ;;  %v317_v1 = vmov 0.0   ;;  %vm318_vm1 = vmmov 0   ;;  %vm154_vm2 = vcmask 1043456   ;;  %s401_s0 = inlined_call_operand.vmem [shape: f32[8,32], index: 0, kind: input, shape index: {}]   ;;  %s402_s1 = inlined_call_operand.vmem [shape: f32[64,32], index: 1, kind: input, shape index: {}]   ;;  %s403_s2 = inlined_call_operand.vmem [shape: f32[1,64], index: 2, kind: input, shape index: {}]   ;;  %s404_s3 = inlined_call_operand.vmem [shape: f32[8,4], index: 3, kind: input, shape index: {}]   ;;  %s405_s4 = inlined_call_operand.vmem [shape: f32[4,64], index: 4, kind: input, shape index: {}]   ;;  %s406_s5 = inlined_call_operand.hbm [shape: f32[8,64], index: 5, kind: output, shape index: {}]  }
   0x1   :  { %v43_v0 = vld [vmem:[%s402_s1 + $0x38] sm:$0xff]  ;;  %268 = vmatprep.subr.mxu0 %v317_v1  ;;  %284 = vmatprep.mubr.msk.f32.mxu0 %vm318_vm1, %v317_v1  ;;  %vm32_vm3 = vcmask 523264   ;;  %v42_v2 = vld [vmem:[%s402_s1 + $0x30] sm:$0xff]  ;;  %vm150_vm4 = vcmask 31744   ;;  %v149_v3 = vld [vmem:[%s405_s4] sm:$0xf] }
   0x2   :  { %269 = vmatpush3.xpose.msk.msra.mxu0 %vm44_vm0, %v43_v0  ;;  %287 = vmatprep.subr.mxu1 %v317_v1  ;;  %v148_v4 = vld [vmem:[%s404_s3] sm:$0xff] }
   0x3   :  { %270 = vmatprep.subr.mxu0 %v317_v1  ;;  %289 = vmatprep.mubr.msk.f32.mxu1 %vm318_vm1, %v317_v1  ;;  %v245_v5 = vld [vmem:[%s403_s2] ss:$0 sm:$0xff] }
   0x4   :  { %288 = vmatpush3.msk.msra.mxu1 %vm154_vm2, %v149_v3  ;;  %33 = vst.msk [vmem:[#allocation2] sm:$0xff] %vm32_vm3, %v245_v5 }
   0x5   :  { %10 = vsyncpa [#allocation4], 0  ;;  %290 = vmatmul.mubr.msk.f32.vlgmr.msra.gmra.mxu1 %vm150_vm4, %v148_v4  ;;  %v41_v6 = vld [vmem:[%s402_s1 + $0x28] sm:$0xff]  ;;  %v40_v7 = vld [vmem:[%s402_s1 + $0x20] sm:$0xff]  ;;  %s319_s14 = smov [#allocation3]  }
   0x6   :  { %271 = vmatpush3.xpose.msk.msra.mxu0 %vm44_vm0, %v42_v2  ;;  %v39_v8 = vld [vmem:[%s402_s1 + $0x18] sm:$0xff]  ;;  %v38_v9 = vld [vmem:[%s402_s1 + $0x10] sm:$0xff]  ;;  %v37_v10 = vld [vmem:[%s402_s1 + $0x8] sm:$0xff]  ;;  %s237_s15 = sshll.u32 %s319_s14, 4  ;;  %s238_s15 = int_to_ptr.vmem [resolvable:$true] %s237_s15 }
   0x7   :  { %272 = vmatprep.subr.mxu0 %v317_v1  ;;  %v36_v11 = vld [vmem:[%s402_s1] sm:$0xff]  ;;  %s295_s1 = scalar_lea.vmem %s238_s15, 128  ;;  %p300_p1 = scmp.lt.s32.totalorder %s238_s15, %s238_s15 }
   0x8   :  { %v35_v12 = vld [vmem:[%s401_s0] sm:$0xff]  ;;  %p296_p0 = scmp.ne.s32.totalorder %s238_s15, %s295_s1  ;;  %p301_p2 = scmp.lt.s32.totalorder %s295_s1, %s295_s1 }
   0xa   :  { %273 = vmatpush3.xpose.msk.msra.mxu0 %vm44_vm0, %v41_v6  ;;  %p302_p3 = por %p301_p2, %p300_p1 }
   0xb   :  { %274 = vmatprep.subr.mxu0 %v317_v1  ;;  %v34_v15 = vld [vmem:[#allocation2] sm:$0xff] }
   0xc   :  { %p303_p4 = pnand %p302_p3, %p296_p0 }
   0xe   :  { %275 = vmatpush3.xpose.msk.msra.mxu0 %vm44_vm0, %v40_v7 }
   0xf   :  { %276 = vmatprep.subr.mxu0 %v317_v1 }
  0x12   :  { %277 = vmatpush3.xpose.msk.msra.mxu0 %vm44_vm0, %v39_v8 }
  0x13   :  { %278 = vmatprep.subr.mxu0 %v317_v1 }
  0x16   :  { %279 = vmatpush3.xpose.msk.msra.mxu0 %vm44_vm0, %v38_v9 }
  0x17   :  { %280 = vmatprep.subr.mxu0 %v317_v1 }
  0x1a   :  { %281 = vmatpush3.xpose.msk.msra.mxu0 %vm44_vm0, %v37_v10 }
  0x1b   :  { %282 = vmatprep.subr.mxu0 %v317_v1 }
  0x1e   :  { %283 = vmatpush3.xpose.msk.msra.mxu0 %vm44_vm0, %v36_v11 }
  0x21   :  { %285 = vmatmul.mubr.msk.f32.vlgmr.msra.gmra.mxu0 %vm44_vm0, %v35_v12 }
  0xc5   :  { %v224_v13 = vpop.f32.mrf.mxu1 }
  0xc7   :  { %v291_v14 = vpop.f32.mrf.mxu1 }
  0xe1   :  { %v138_v16 = vpop.f32.mrf.mxu0 }
  0xe2   :  { %v142_v17 = vadd.f32 %v138_v16, %v34_v15 }
  0xe3   :  { %v286_v18 = vpop.f32.mrf.mxu0 }
  0xe4   :  { %144 = vst.msk [vmem:[#allocation2] sm:$0xff] %vm32_vm3, %v142_v17 }
  0xeb   :  { %v228_v19 = vld [vmem:[#allocation2] sm:$0xff] }
  0xec   :  { %v229_v20 = vadd.f32 %v228_v19, %v224_v13 }
  0xee   :  { %230 = vst.msk [vmem:[#allocation3] sm:$0xff] %vm32_vm3, %v229_v20 }
  0xef   :  { %306 = shalt.err (!%p303_p4)
}
  0xf0   :  { %240 = dma.vmem_to_hbm [thread:$0]  %s238_s15, 128, %s406_s5, [#allocation4]  }
  0xf1   :  { %315 = dma.done.wait [#allocation4], 128  }
  0xf2   :  { %316 = vsyncadd [#allocation4], 4294967168 }
  0xf3   :  { %244 = vsyncpa [#allocation4], 1 }

</bundles_post_ra>
